<compile_context>
chip_gen: v5e
topology: v5e:2x2
jax: 0.10.0
libtpu: 0.0.40
codegen_flags: <defaults>
</compile_context>

<pallas_src>
import jax
import jax.numpy as jnp
from jax.experimental import pallas as pl
from jax.experimental.pallas import tpu as pltpu


def _sym_ce_kernel(sim_ref, a_tgt_ref, t_tgt_ref, out_ref,
                   m_col_ref, s_col_ref, acc_ref):
    blk = pl.program_id(0)
    nblk = pl.num_programs(0)
    tm = sim_ref.shape[0]
    n = sim_ref.shape[1]

    sim = sim_ref[...].astype(jnp.float32)      # (TM, N) block, cast in-kernel
    a_tgt = a_tgt_ref[...]                      # (TM, 1) int32 (rows of block)
    t_tgt = t_tgt_ref[...]                      # (1, N)  int32

    @pl.when(blk == 0)
    def _init():
        m_col_ref[...] = jnp.full_like(m_col_ref, -1e30)
        s_col_ref[...] = jnp.zeros_like(s_col_ref)
        acc_ref[...] = jnp.zeros_like(acc_ref)

    # ---- fused target gather (audio pick + text pick in a single pass) -----
    # Broadcast-shaped iotas (1,N)/(TM,1); compares broadcast to (TM,N).
    col_ids = jax.lax.broadcasted_iota(jnp.int32, (1, n), 1)
    row_ids = blk * tm + jax.lax.broadcasted_iota(jnp.int32, (tm, 1), 0)
    mask = ((col_ids == a_tgt).astype(jnp.float32)
            + (row_ids == t_tgt).astype(jnp.float32))             # (TM, N)
    picked_row = jnp.sum(sim * mask, axis=1, keepdims=True)       # (TM, 1)

    # ---- audio direction: softmax over columns for this row block ----------
    row_max = jnp.max(sim, axis=1, keepdims=True)                 # (TM, 1)
    e_row = jnp.exp(sim - row_max)                                # EUP
    row_sum = jnp.sum(e_row, axis=1, keepdims=True)               # VPU (+XLU tail)
    row_lse = jnp.log(row_sum) + row_max                          # (TM, 1)
    acc_ref[...] += jnp.sum(row_lse - picked_row, axis=0, keepdims=True)

    # ---- text direction: online (flash-style) column logsumexp -------------
    blk_col_max = jnp.max(sim, axis=0, keepdims=True)             # (1, N)
    m_old = m_col_ref[...]
    m_new = jnp.maximum(m_old, blk_col_max)
    e_col = jnp.exp(sim - m_new)                                  # (TM, N)
    col_sum_blk = jnp.sum(e_col, axis=0, keepdims=True)           # (1, N)
    s_col_ref[...] = s_col_ref[...] * jnp.exp(m_old - m_new) + col_sum_blk
    m_col_ref[...] = m_new

    @pl.when(blk == nblk - 1)
    def _finalize():
        col_lse = jnp.log(s_col_ref[...]) + m_col_ref[...]        # (1, N)
        total = acc_ref[...] + jnp.sum(col_lse, axis=1, keepdims=True)
        out_ref[...] = total * (0.5 / n)


def _vmem_budget_bytes():
    """(block-dependent VMEM budget, vmem_limit_bytes), per TPU generation."""
    cap = 64 * 1024 * 1024  # conservative default (v7x per-TC physical)
    try:
        cap = int(pltpu.get_tpu_info().vmem_capacity_bytes)
    except Exception:
        pass
    if cap <= 64 * 1024 * 1024:
        # v7x: 64 MiB physical -> stay well inside it.
        return 40 * 1024 * 1024, 48 * 1024 * 1024
    # v5e / v6e: 128 MiB physical -> larger row blocks, fewer grid steps.
    return 48 * 1024 * 1024, 100 * 1024 * 1024


def _pick_block_rows(n, itemsize, budget):
    """Largest row-block dividing N whose block-dependent VMEM fits `budget`.

    Per-row model: 2x double-buffered native-dtype input block, plus f32
    temporaries for the cast copy, e_row, e_col and one mask-sized temp.
    Fixed: two (1,N) f32 column scratches + small slack.
    """
    fixed = 2 * 4 * n + 4096
    per_row = n * (2 * itemsize + 4 * 4)
    for tm in (1024, 512, 256, 128, 64, 32, 16, 8):
        if n % tm == 0 and tm <= n and fixed + tm * per_row <= budget:
            return tm
    return n  # single block; block dims then equal the full array dims


def symmetric_cross_entropy_loss(similarity, audio_target, text_target,
                                 block_rows=None):
    """similarity: (N, N) float (any dtype); targets: (N,) int class indices.

    Note: out-of-range target indices silently contribute 0 to the gather
    (inflating the loss) instead of raising like torch.F.cross_entropy.
    """
    n = similarity.shape[0]
    assert similarity.shape == (n, n)
    a_tgt = audio_target.astype(jnp.int32).reshape(n, 1)
    t_tgt = text_target.astype(jnp.int32).reshape(1, n)

    block_budget, vmem_limit = _vmem_budget_bytes()
    if block_rows is None:
        block_rows = _pick_block_rows(
            n, jnp.dtype(similarity.dtype).itemsize, block_budget)
    assert n % block_rows == 0
    grid = (n // block_rows,)

    out = pl.pallas_call(
        _sym_ce_kernel,
        out_shape=jax.ShapeDtypeStruct((1, 1), jnp.float32),
        grid_spec=pltpu.PrefetchScalarGridSpec(
            num_scalar_prefetch=0,
            grid=grid,
            in_specs=[
                pl.BlockSpec((block_rows, n), lambda i: (i, 0)),   # sim block
                pl.BlockSpec((block_rows, 1), lambda i: (i, 0)),   # audio tgt
                pl.BlockSpec((1, n), lambda i: (0, 0)),            # text tgt
            ],
            out_specs=pl.BlockSpec((1, 1), lambda i: (0, 0)),
            scratch_shapes=[
                pltpu.VMEM((1, n), jnp.float32),   # running column max
                pltpu.VMEM((1, n), jnp.float32),   # rescaled column exp-sum
                pltpu.VMEM((1, 1), jnp.float32),   # scalar loss accumulator
            ],
        ),
        compiler_params=pltpu.CompilerParams(
            # row-block axis carries the column-direction reduction state ->
            # must stay sequential ("arbitrary").
            dimension_semantics=("arbitrary",),
            vmem_limit_bytes=vmem_limit,
        ),
    )(similarity, a_tgt, t_tgt)   # native dtype; cast to f32 inside the kernel
    return out[0, 0]


def _reference(similarity, audio_target, text_target):
    # Pure-JAX reference mirroring F.cross_entropy semantics.
    def ce(logits, targets):
        lse = jax.nn.logsumexp(logits, axis=1)
        picked = logits[jnp.arange(logits.shape[0]), targets]
        return jnp.mean(lse - picked)

    audio_loss = ce(similarity, audio_target)
    text_loss = ce(similarity.T, text_target)
    return 0.5 * (audio_loss + text_loss)


if __name__ == "__main__":
    N = 256
    key = jax.random.PRNGKey(0)
    k1, k2, k3 = jax.random.split(key, 3)
    similarity = jax.random.normal(k1, (N, N), dtype=jnp.float32)
    audio_target = jax.random.permutation(k2, N).astype(jnp.int32)
    text_target = jax.random.permutation(k3, N).astype(jnp.int32)

    # Multi-block path (grid of 4 row blocks), f32 input.
    loss = symmetric_cross_entropy_loss(similarity, audio_target, text_target,
                                        block_rows=64)
    loss = jax.block_until_ready(loss)
    ref = _reference(similarity, audio_target, text_target)
    assert jnp.allclose(loss, ref, atol=2e-5, rtol=2e-5), (loss, ref)

    # Native bf16 input (no host-side cast), auto-chosen block size.
    sim_bf16 = similarity.astype(jnp.bfloat16)
    loss_bf16 = symmetric_cross_entropy_loss(sim_bf16, audio_target, text_target)
    loss_bf16 = jax.block_until_ready(loss_bf16)
    ref_bf16 = _reference(sim_bf16.astype(jnp.float32), audio_target, text_target)
    assert jnp.allclose(loss_bf16, ref_bf16, atol=1e-4, rtol=1e-4), (loss_bf16, ref_bf16)

    print("KERNEL_OK")
</pallas_src>

<mosaic_0001>
module attributes {stable_mosaic.version = 11 : i64} {
  func.func @_sym_ce_kernel(%arg0: i32, %arg1: memref<64x256xf32, #tpu.memory_space<vmem>>, %arg2: memref<64x1xi32, #tpu.memory_space<vmem>>, %arg3: memref<1x256xi32, #tpu.memory_space<vmem>>, %arg4: memref<1x1xf32, #tpu.memory_space<vmem>>, %arg5: memref<1x256xf32, #tpu.memory_space<vmem>>, %arg6: memref<1x256xf32, #tpu.memory_space<vmem>>, %arg7: memref<1x1xf32, #tpu.memory_space<vmem>>) attributes {dimension_semantics = [#tpu.dimension_semantics<arbitrary>], iteration_bounds = array<i64: 4>, scalar_prefetch = 0 : i64, scratch_operands = 3 : i64, tpu.core_type = #tpu.core_type<tc>, window_params = [{transform_indices = @transform_0, window_bounds = array<i64: 64, 256>}, {transform_indices = @transform_1, window_bounds = array<i64: 64, 1>}, {pipeline_mode = #tpu.pipeline_mode<synchronous>, transform_indices = @transform_2, window_bounds = array<i64: 1, 256>}, {pipeline_mode = #tpu.pipeline_mode<synchronous>, transform_indices = @transform_3, window_bounds = array<i64: 1, 1>}]} {
    %c0 = arith.constant 0 : index
    %c0_0 = arith.constant 0 : index
    %0 = vector.load %arg1[%c0, %c0_0] : memref<64x256xf32, #tpu.memory_space<vmem>>, vector<64x256xf32>
    %c0_1 = arith.constant 0 : index
    %c0_2 = arith.constant 0 : index
    %1 = vector.load %arg2[%c0_1, %c0_2] : memref<64x1xi32, #tpu.memory_space<vmem>>, vector<64x1xi32>
    %c0_3 = arith.constant 0 : index
    %c0_4 = arith.constant 0 : index
    %2 = vector.load %arg3[%c0_3, %c0_4] : memref<1x256xi32, #tpu.memory_space<vmem>>, vector<1x256xi32>
    %c0_i32 = arith.constant 0 : i32
    %3 = arith.cmpi eq, %arg0, %c0_i32 : i32
    %4 = arith.extui %3 : i1 to i32
    %c0_i32_5 = arith.constant 0 : i32
    %5 = arith.cmpi ne, %4, %c0_i32_5 : i32
    scf.if %5 {
      %cst_24 = arith.constant -1.000000e+30 : f32
      %59 = vector.broadcast %cst_24 : f32 to vector<1x256xf32>
      %c0_25 = arith.constant 0 : index
      %c0_26 = arith.constant 0 : index
      %60 = vector.load %arg5[%c0_25, %c0_26] : memref<1x256xf32, #tpu.memory_space<vmem>>, vector<1x256xf32>
      tpu.vector_store %arg5[%c0_25, %c0_26], %59 {strides = array<i32>} : memref<1x256xf32, #tpu.memory_space<vmem>>, vector<1x256xf32>,
      %cst_27 = arith.constant 0.000000e+00 : f32
      %61 = vector.broadcast %cst_27 : f32 to vector<1x256xf32>
      %c0_28 = arith.constant 0 : index
      %c0_29 = arith.constant 0 : index
      %62 = vector.load %arg6[%c0_28, %c0_29] : memref<1x256xf32, #tpu.memory_space<vmem>>, vector<1x256xf32>
      tpu.vector_store %arg6[%c0_28, %c0_29], %61 {strides = array<i32>} : memref<1x256xf32, #tpu.memory_space<vmem>>, vector<1x256xf32>,
      %cst_30 = arith.constant 0.000000e+00 : f32
      %63 = vector.broadcast %cst_30 : f32 to vector<1x1xf32>
      %c0_31 = arith.constant 0 : index
      %c0_32 = arith.constant 0 : index
      %64 = vector.load %arg7[%c0_31, %c0_32] : memref<1x1xf32, #tpu.memory_space<vmem>>, vector<1x1xf32>
      tpu.vector_store %arg7[%c0_31, %c0_32], %63 {strides = array<i32>} : memref<1x1xf32, #tpu.memory_space<vmem>>, vector<1x1xf32>,
    } else {
    }
    %6 = tpu.iota {dimensions = array<i32: 1>} : vector<1x256xi32>
    %c64_i32 = arith.constant 64 : i32
    %7 = arith.muli %arg0, %c64_i32 : i32
    %8 = tpu.iota {dimensions = array<i32: 0>} : vector<64x1xi32>
    %9 = vector.broadcast %7 : i32 to vector<64x1xi32>
    %10 = arith.addi %9, %8 : vector<64x1xi32>
    %11 = vector.broadcast %6 : vector<1x256xi32> to vector<64x256xi32>
    %12 = vector.broadcast %1 : vector<64x1xi32> to vector<64x256xi32>
    %13 = arith.cmpi eq, %11, %12 : vector<64x256xi32>
    %14 = arith.extui %13 : vector<64x256xi1> to vector<64x256xi32>
    %15 = arith.sitofp %14 : vector<64x256xi32> to vector<64x256xf32>
    %16 = vector.broadcast %10 : vector<64x1xi32> to vector<64x256xi32>
    %17 = vector.broadcast %2 : vector<1x256xi32> to vector<64x256xi32>
    %18 = arith.cmpi eq, %16, %17 : vector<64x256xi32>
    %19 = arith.extui %18 : vector<64x256xi1> to vector<64x256xi32>
    %20 = arith.sitofp %19 : vector<64x256xi32> to vector<64x256xf32>
    %21 = arith.addf %15, %20 : vector<64x256xf32>
    %22 = arith.mulf %0, %21 : vector<64x256xf32>
    %cst = arith.constant dense<0.000000e+00> : vector<64xf32>
    %23 = vector.multi_reduction <add>, %22, %cst [1] : vector<64x256xf32> to vector<64xf32>
    %24 = vector.shape_cast %23 : vector<64xf32> to vector<64x1xf32>
    %cst_6 = arith.constant dense<0xFF800000> : vector<64xf32>
    %25 = vector.multi_reduction <maximumf>, %0, %cst_6 [1] : vector<64x256xf32> to vector<64xf32>
    %26 = vector.shape_cast %25 : vector<64xf32> to vector<64x1xf32>
    %27 = vector.broadcast %26 : vector<64x1xf32> to vector<64x256xf32>
    %28 = arith.subf %0, %27 : vector<64x256xf32>
    %29 = math.exp %28 : vector<64x256xf32>
    %cst_7 = arith.constant dense<0.000000e+00> : vector<64xf32>
    %30 = vector.multi_reduction <add>, %29, %cst_7 [1] : vector<64x256xf32> to vector<64xf32>
    %31 = vector.shape_cast %30 : vector<64xf32> to vector<64x1xf32>
    %32 = math.log %31 : vector<64x1xf32>
    %33 = arith.addf %32, %26 : vector<64x1xf32>
    %c0_8 = arith.constant 0 : index
    %c0_9 = arith.constant 0 : index
    %34 = vector.load %arg7[%c0_8, %c0_9] : memref<1x1xf32, #tpu.memory_space<vmem>>, vector<1x1xf32>
    %35 = arith.subf %33, %24 : vector<64x1xf32>
    %cst_10 = arith.constant dense<0.000000e+00> : vector<1xf32>
    %36 = vector.multi_reduction <add>, %35, %cst_10 [0] : vector<64x1xf32> to vector<1xf32>
    %37 = vector.shape_cast %36 : vector<1xf32> to vector<1x1xf32>
    %38 = arith.addf %34, %37 : vector<1x1xf32>
    %c0_11 = arith.constant 0 : index
    %c0_12 = arith.constant 0 : index
    %39 = vector.load %arg7[%c0_11, %c0_12] : memref<1x1xf32, #tpu.memory_space<vmem>>, vector<1x1xf32>
    tpu.vector_store %arg7[%c0_11, %c0_12], %38 {strides = array<i32>} : memref<1x1xf32, #tpu.memory_space<vmem>>, vector<1x1xf32>,
    %cst_13 = arith.constant dense<0xFF800000> : vector<256xf32>
    %40 = vector.multi_reduction <maximumf>, %0, %cst_13 [0] : vector<64x256xf32> to vector<256xf32>
    %41 = vector.shape_cast %40 : vector<256xf32> to vector<1x256xf32>
    %c0_14 = arith.constant 0 : index
    %c0_15 = arith.constant 0 : index
    %42 = vector.load %arg5[%c0_14, %c0_15] : memref<1x256xf32, #tpu.memory_space<vmem>>, vector<1x256xf32>
    %43 = arith.maximumf %42, %41 : vector<1x256xf32>
    %44 = vector.broadcast %43 : vector<1x256xf32> to vector<64x256xf32>
    %45 = arith.subf %0, %44 : vector<64x256xf32>
    %46 = math.exp %45 : vector<64x256xf32>
    %cst_16 = arith.constant dense<0.000000e+00> : vector<256xf32>
    %47 = vector.multi_reduction <add>, %46, %cst_16 [0] : vector<64x256xf32> to vector<256xf32>
    %48 = vector.shape_cast %47 : vector<256xf32> to vector<1x256xf32>
    %c0_17 = arith.constant 0 : index
    %c0_18 = arith.constant 0 : index
    %49 = vector.load %arg6[%c0_17, %c0_18] : memref<1x256xf32, #tpu.memory_space<vmem>>, vector<1x256xf32>
    %50 = arith.subf %42, %43 : vector<1x256xf32>
    %51 = math.exp %50 : vector<1x256xf32>
    %52 = arith.mulf %49, %51 : vector<1x256xf32>
    %53 = arith.addf %52, %48 : vector<1x256xf32>
    %c0_19 = arith.constant 0 : index
    %c0_20 = arith.constant 0 : index
    %54 = vector.load %arg6[%c0_19, %c0_20] : memref<1x256xf32, #tpu.memory_space<vmem>>, vector<1x256xf32>
    tpu.vector_store %arg6[%c0_19, %c0_20], %53 {strides = array<i32>} : memref<1x256xf32, #tpu.memory_space<vmem>>, vector<1x256xf32>,
    %c0_21 = arith.constant 0 : index
    %c0_22 = arith.constant 0 : index
    %55 = vector.load %arg5[%c0_21, %c0_22] : memref<1x256xf32, #tpu.memory_space<vmem>>, vector<1x256xf32>
    tpu.vector_store %arg5[%c0_21, %c0_22], %43 {strides = array<i32>} : memref<1x256xf32, #tpu.memory_space<vmem>>, vector<1x256xf32>,
    %c3_i32 = arith.constant 3 : i32
    %56 = arith.cmpi eq, %arg0, %c3_i32 : i32
    %57 = arith.extui %56 : i1 to i32
    %c0_i32_23 = arith.constant 0 : i32
    %58 = arith.cmpi ne, %57, %c0_i32_23 : i32
    scf.if %58 {
      %c0_24 = arith.constant 0 : index
      %c0_25 = arith.constant 0 : index
      %59 = vector.load %arg6[%c0_24, %c0_25] : memref<1x256xf32, #tpu.memory_space<vmem>>, vector<1x256xf32>
      %60 = math.log %59 : vector<1x256xf32>
      %c0_26 = arith.constant 0 : index
      %c0_27 = arith.constant 0 : index
      %61 = vector.load %arg5[%c0_26, %c0_27] : memref<1x256xf32, #tpu.memory_space<vmem>>, vector<1x256xf32>
      %62 = arith.addf %60, %61 : vector<1x256xf32>
      %c0_28 = arith.constant 0 : index
      %c0_29 = arith.constant 0 : index
      %63 = vector.load %arg7[%c0_28, %c0_29] : memref<1x1xf32, #tpu.memory_space<vmem>>, vector<1x1xf32>
      %cst_30 = arith.constant dense<0.000000e+00> : vector<1xf32>
      %64 = vector.multi_reduction <add>, %62, %cst_30 [1] : vector<1x256xf32> to vector<1xf32>
      %65 = vector.shape_cast %64 : vector<1xf32> to vector<1x1xf32>
      %66 = arith.addf %63, %65 : vector<1x1xf32>
      %cst_31 = arith.constant 0.001953125 : f32
      %67 = vector.broadcast %cst_31 : f32 to vector<1x1xf32>
      %68 = arith.mulf %66, %67 : vector<1x1xf32>
      %c0_32 = arith.constant 0 : index
      %c0_33 = arith.constant 0 : index
      %69 = vector.load %arg4[%c0_32, %c0_33] : memref<1x1xf32, #tpu.memory_space<vmem>>, vector<1x1xf32>
      tpu.vector_store %arg4[%c0_32, %c0_33], %68 {strides = array<i32>} : memref<1x1xf32, #tpu.memory_space<vmem>>, vector<1x1xf32>,
    } else {
    }
    return
  }
  func.func @transform_0(%arg0: i32) -> (i32, i32) {
    %c0_i32 = arith.constant 0 : i32
    %c0_i32_0 = arith.constant 0 : i32
    return %arg0, %c0_i32 : i32, i32
  }
  func.func @transform_1(%arg0: i32) -> (i32, i32) {
    %c0_i32 = arith.constant 0 : i32
    %c0_i32_0 = arith.constant 0 : i32
    return %arg0, %c0_i32 : i32, i32
  }
  func.func @transform_2(%arg0: i32) -> (i32, i32) {
    %c0_i32 = arith.constant 0 : i32
    %c0_i32_0 = arith.constant 0 : i32
    %c0_i32_1 = arith.constant 0 : i32
    return %c0_i32, %c0_i32_0 : i32, i32
  }
  func.func @transform_3(%arg0: i32) -> (i32, i32) {
    %c0_i32 = arith.constant 0 : i32
    %c0_i32_0 = arith.constant 0 : i32
    %c0_i32_1 = arith.constant 0 : i32
    return %c0_i32, %c0_i32_0 : i32, i32
  }
}

</mosaic_0001>

<bundles_post_ra>
// kernel: tpu_custom_call.1
= control target key start
LH: loop header
LB: loop body
LE: loop exit
PB: predicated region body
PF: predicated region fallthrough
CT: control target
= control target key end

     0   :  { %8 = vsyncpa [#allocation6], 0  ;;  %s1605_s0 = inlined_call_operand.hbm [shape: f32[256,256], index: 0, kind: input, shape index: {}]   ;;  %s1606_s1 = inlined_call_operand.vmem [shape: s32[256,1], index: 1, kind: input, shape index: {}]   ;;  %s1607_s2 = inlined_call_operand.vmem [shape: s32[1,256], index: 2, kind: input, shape index: {}]   ;;  %s1608_s3 = inlined_call_operand.hbm [shape: f32[1,1], index: 3, kind: output, shape index: {}]  }
   0x1   :  { %10 = vsyncpa [#allocation6 + $0x1], 0 }
   0x2   :  { %11 = vsyncpa [#allocation7], 0  ;;  %s1125_s12 = smov 0   ;;  %s1127_s13 = smov 0  }
   0x3   :  { %s1129_s14 = smov 0   ;;  %s1131_s15 = smov 0  }
   0x4 LB: > { %s1144_s16 = sadd.s32 4294967295, %s1096_s15   ;;  %s1147_s17 = sadd.s32 1, %s1096_s15   ;;  %s1096_s15 = sphi %s1131_s15, %s1641_s15   ;;  %s1092_s14 = sphi %s1129_s14, %s1640_s14   ;;  %s1088_s13 = sphi %s1127_s13, %s1639_s13   ;;  %s1084_s12 = sphi %s1125_s12, %s1638_s12  }
   0x5   : > { %s21_s18 = ssub.s32 %s1096_s15, %s1147_s17  ;;  %s24_s19 = sadd.s32 1, %s1092_s14 }
   0x6   : > { %p22_p0 = scmp.eq.s32.totalorder %s21_s18, 0  ;;  %p31_p1 = scmp.ne.s32.totalorder %s1092_s14, %s1088_s13 }
   0x7   : > { %p32_p2 = scmp.eq.s32.totalorder %s1096_s15, 0  ;;  %p37_p3 = scmp.ne.s32.totalorder %s1088_s13, %s1084_s12 }
   0x8   : > { %s1157_s20 = scalar_select %p22_p0, %s1092_s14, %s24_s19  }
   0x9   : > { %p1159_p4 = por %p32_p2, %p31_p1  ;;  %p38_p5 = scmp.eq.s32.totalorder %s1144_s16, 0 }
   0xa   : > { %p871_p6 = scmp.lt.s32.totalorder %s1096_s15, 4  ;;  %s132_s23 = sand.u32 1, %s1092_s14  }
   0xb   : > { %p1165_p7 = por %p38_p5, %p37_p3  ;;  %s812_s24 = sshll.u32 %s132_s23, 7 }
   0xc   : > { %s860_s25 = sshll.u32 %s1096_s15, 7  ;;  %s136_s29 = scalar_lea.vmem [#allocation5], %s812_s24 }
   0xd   : > { %s142_s28 = scalar_lea.hbm %s1605_s0, %s860_s25  ;;  %s145_s30 = sshll.u32 %s136_s29, 4  ;;  %s146_s30 = int_to_ptr.vmem [resolvable:$true] %s145_s30 }
   0xe   : > { %s143_s4 = sshll.u32 %s142_s28, 4  ;;  %p1176_p8 = pnand %p871_p6, %p1159_p4  ;;  %s144_s4 = int_to_ptr.hbm [resolvable:$true] %s143_s4 }
   0xf   : > { %p816_p9 = scmp.ge.s32.totalorder %s1096_s15, 1  ;;  %s133_s6 = scalar_lea.sflag [#allocation6], %s132_s23 }
  0x10   : > { %s1000_s7 = sshra.s32 %s144_s4, 4  ;;  %p1004_p11 = pneg %p1176_p8  ;;  %s1001_s7 = int_to_ptr.hbm [resolvable:$true] %s1000_s7 }
  0x11   : > { %s1002_s8 = scalar_lea.hbm %s1001_s7, 128  ;;  %s1007_s11 = scalar_lea.hbm %s1605_s0, 512 }
  0x12   : > { %p1003_p10 = scmp.ne.s32.totalorder %s1001_s7, %s1002_s8  ;;  %p1008_p0 = scmp.lt.s32.totalorder %s1001_s7, %s1605_s0 }
  0x13   : > { %p1009_p1 = scmp.lt.s32.totalorder %s1007_s11, %s1002_s8 }
  0x14   : > { %p1005_p12 = pnand %p1004_p11, %p1003_p10 }
  0x15   : > { %p1010_p2 = por %p1009_p1, %p1008_p0 }
  0x16   : > { %p1006_p13 = pneg %p1005_p12 }
  0x18   : > { %p1011_p3 = pnand %p1010_p2, %p1006_p13 }
  0x1a   : > { %1014 = shalt.err (!%p1011_p3)
}
  0x1b   : > { %s1098_s19 = smov 256   ;;  %s1099_s21 = smov 16  }
  0x1c   : > { %870 = dma.hbm_to_vmem [thread:$0]  (!%p1176_p8), %s144_s4, 2048, %s146_s30, %s133_s6, %s1098_s19, %s1098_s19, %s1099_s21  }
  0x1d   : > { %p162_p4 = scmp.lt.s32.totalorder %s1096_s15, 5 }
  0x1f   : > { %p163_p5 = pnand %p816_p9, %p162_p4 }
  0x21   : > { %166 = sbr.rel (%p163_p5) target bundleno = 538 (0x21a), region = 32 }
  0x26   : > { %s168_s23 = sand.u32 1, %s1088_s13  }
  0x27   : > { %s817_s24 = sshll.u32 %s168_s23, 7  ;;  %s169_s25 = scalar_lea.sflag [#allocation6], %s168_s23 }
  0x28   : > { %s172_s26 = scalar_lea.vmem [#allocation5], %s817_s24 }
  0x29   : > { %1075 = dma.done.wait (%p1165_p7), %s169_s25, 2048  }
  0x2a   : > { %1077 = vsyncadd (%p1165_p7), %s169_s25, 4294965248  ;;  %s818_s27 = sshll.u32 %s1144_s16, 3  ;;  %v1200_v0 = vld [vmem:[%s172_s26] sm:$0xff]  ;;  %v1202_v1 = vld [vmem:[%s172_s26 + $0x8] sm:$0xff]  ;;  %p820_p7 = scmp.ne.s32.totalorder %s1144_s16, 0 }
  0x2b   : > { %p198_p6 = scmp.lt.s32.totalorder %s818_s27, 31  ;;  %v1204_v2 = vld [vmem:[%s172_s26 + $0x10] sm:$0xff]  ;;  %v1206_v3 = vld [vmem:[%s172_s26 + $0x18] sm:$0xff]  ;;  %v1208_v4 = vld [vmem:[%s172_s26 + $0x20] sm:$0xff] }
  0x2c   : > { %v1210_v5 = vld [vmem:[%s172_s26 + $0x28] sm:$0xff]  ;;  %v1215_v6 = vld [vmem:[%s172_s26 + $0x30] sm:$0xff]  ;;  %v1217_v7 = vld [vmem:[%s172_s26 + $0x38] sm:$0xff] }
  0x2d   : > { %s1643_s27 = smov (!%p198_p6, %s818_s27), 31  ;;  %v1219_v8 = vld [vmem:[%s172_s26 + $0x40] sm:$0xff]  ;;  %v1221_v9 = vld [vmem:[%s172_s26 + $0x48] sm:$0xff]  ;;  %v1223_v10 = vld [vmem:[%s172_s26 + $0x50] sm:$0xff] }
  0x2e   : > { %s819_s28 = sshll.u32 %s1643_s27, 3  ;;  %v1225_v11 = vld [vmem:[%s172_s26 + $0x58] sm:$0xff]  ;;  %v1227_v12 = vld [vmem:[%s172_s26 + $0x60] sm:$0xff]  ;;  %v1229_v13 = vld [vmem:[%s172_s26 + $0x68] sm:$0xff]  ;;  %231 = sbr.rel (%p820_p7) target bundleno = 56 (0x38), region = 40 }
  0x2f   : > { %s201_s29 = scalar_lea.vmem %s1606_s1, %s819_s28  ;;  %v1231_v14 = vld [vmem:[%s172_s26 + $0x70] sm:$0xff]  ;;  %v1233_v15 = vld [vmem:[%s172_s26 + $0x78] sm:$0xff] }
  0x30   : > { %v219_v16 = vld [vmem:[%s201_s29] sm:$0xff]  ;;  %v220_v17 = vld [vmem:[%s201_s29 + $0x8] sm:$0xff]  ;;  %v221_v18 = vld [vmem:[%s201_s29 + $0x10] sm:$0xff] }
  0x31   : > { %v222_v19 = vld [vmem:[%s201_s29 + $0x18] sm:$0xff]  ;;  %v223_v20 = vld [vmem:[%s201_s29 + $0x20] sm:$0xff]  ;;  %v224_v21 = vld [vmem:[%s201_s29 + $0x28] sm:$0xff] }
  0x32   : > { %v225_v22 = vld [vmem:[%s201_s29 + $0x30] sm:$0xff]  ;;  %v226_v23 = vld [vmem:[%s201_s29 + $0x38] sm:$0xff]  ;;  %v1238_v24 = vld [vmem:[%s1607_s2] sm:$0x3] }
  0x33   : > { %v232_v25 = vlaneseq  ;;  %vm238_vm0 = vcmask 0   ;;  %v1100_v26 = vmov 0.0   ;;  %v1101_v27 = vmov -1e+30  }
  0x34   : > { %239 = vst.msk [vmem:[#allocation4] sm:$0x1] %vm238_vm0, %v1100_v26 }
  0x35   : > { %vm234_vm1 = vcmp.lt.s32.totalorder %v232_v25, 256 }
  0x36   : > { %236 = vst.msk [vmem:[#allocation2] sm:$0x3] %vm234_vm1, %v1101_v27 }
  0x37   : > { %237 = vst.msk [vmem:[#allocation3] sm:$0x3] %vm234_vm1, %v1100_v26 }
  0x38 PF: > { %v452_v28 = vmax.f32 %v1219_v8, %v1221_v9  ;;  %v446_v29 = vmax.f32 %v1208_v4, %v1210_v5  ;;  %v440_v30 = vmax.f32 %v1200_v0, %v1202_v1  ;;  %v1102_v31 = vmov 0   ;;  %s821_s5 = sshll.u32 %s1144_s16, 6  ;;  %p854_p8 = scmp.ne.s32.totalorder %s1144_s16, 3 }
  0x39   : > { %913 = vset.pattern.permute.xlu2 %v1102_v31  ;;  %914 = vset.pattern.permute.xlu0 %v1102_v31  ;;  %v455_v32 = vmax.f32 %v1223_v10, %v1225_v11  ;;  %v449_v33 = vmax.f32 %v1215_v6, %v1217_v7  ;;  %v443_v34 = vmax.f32 %v1204_v2, %v1206_v3  ;;  %v1611_v55 = vlaneseq }
  0x3a   : > { %453 = vmax.xlane.f32.xlu2 %v452_v28  ;;  %447 = vmax.xlane.f32.xlu1 %v446_v29  ;;  %v461_v35 = vmax.f32 %v1231_v14, %v1233_v15  ;;  %v458_v36 = vmax.f32 %v1227_v12, %v1229_v13  ;;  %v585_v37 = vmax.f32 %v1200_v0, %v1208_v4  ;;  %vm615_vm4 = vcmask 1040384  }
  0x3b   : > { %441 = vmax.xlane.f32.xlu0 %v440_v30  ;;  %915 = vset.pattern.permute.xlu1 %v1102_v31  ;;  %v586_v38 = vmax.f32 %v1204_v2, %v1215_v6  ;;  %v598_v39 = vmax.f32 %v1202_v1, %v1210_v5  ;;  %v599_v40 = vmax.f32 %v1206_v3, %v1217_v7  ;;  %v1285_v63 = vshrl.u32 %v1611_v55, 7 }
  0x3c   : > { %v587_v41 = vmax.f32 %v585_v37, %v1219_v8 }
  0x3d   : > { %v588_v42 = vmax.f32 %v586_v38, %v1223_v10  ;;  %v600_v43 = vmax.f32 %v598_v39, %v1221_v9  ;;  %v601_v44 = vmax.f32 %v599_v40, %v1225_v11 }
  0x3e   : > { %v589_v45 = vmax.f32 %v587_v41, %v1227_v12  ;;  %v248_v41 = vadd.s32 24, %v1285_v63 }
  0x3f   : > { %v590_v46 = vmax.f32 %v588_v42, %v1231_v14  ;;  %v602_v47 = vmax.f32 %v600_v43, %v1229_v13  ;;  %v603_v48 = vmax.f32 %v601_v44, %v1233_v15 }
  0x41   : > { %v591_v49 = vmax.f32 %v589_v45, %v590_v46  ;;  %v604_v50 = vmax.f32 %v602_v47, %v603_v48  ;;  %v1609_v46 = vmov 0.0  }
  0x42   : > { %456 = vmax.xlane.f32.xlu2 %v455_v32  ;;  %450 = vmax.xlane.f32.xlu1 %v449_v33  ;;  %v1310_v32 = vperm.slane %v1238_v24, 1 }
  0x43   : > { %444 = vmax.xlane.f32.xlu0 %v443_v34  ;;  %v592_v51 = vrot.slane %v591_v49, 4  ;;  %v605_v52 = vrot.slane %v604_v50, 4 }
  0x45   : > { %v593_v56 = vmax.f32 %v591_v49, %v592_v51  ;;  %v606_v57 = vmax.f32 %v604_v50, %v605_v52  ;;  %v1333_v52 = vld [vmem:[#allocation2] sm:$0x3] }
  0x47   : > { %v594_v61 = vrot.slane %v593_v56, 2  ;;  %v607_v62 = vrot.slane %v606_v57, 2 }
  0x49   : > { %v595_v25 = vmax.f32 %v593_v56, %v594_v61  ;;  %v608_v26 = vmax.f32 %v606_v57, %v607_v62 }
  0x4a   : > { %462 = vmax.xlane.f32.xlu1 %v461_v35 }
  0x4b   : > { %459 = vmax.xlane.f32.xlu0 %v458_v36  ;;  %v596_v37 = vrot.slane %v595_v25, 1  ;;  %v609_v38 = vrot.slane %v608_v26, 1 }
  0x4d   : > { %v597_v42 = vmax.f32 %v595_v25, %v596_v37  ;;  %v610_v43 = vmax.f32 %v608_v26, %v609_v38 }
  0x4f   : > { %v614_v56 = vrot.slane %v610_v43, 7 }
  0x5a   : > { %263 = vperm.xlu2 %913, %v219_v16  }
  0x5f   : > { %266 = vperm.xlu0 %914, %v220_v17   ;;  %v1289_v17 = vstv %s821_s5 }
  0x60   : > { %v254_v27 = vadd.s32 %v1289_v17, %v1285_v63  ;;  %v1341_v61 = vadd.s32 %v1289_v17, %v248_v41 }
  0x62   : > { %272 = vperm.xlu2 %913, %v222_v19   ;;  %vm337_vm3 = vcmp.eq.s32.totalorder %v254_v27, %v1310_v32 }
  0x63   : > { %269 = vperm.xlu1 %915, %v221_v18   ;;  %v1292_v18 = vand.u32 127, %v1611_v55 }
  0x65   : > { %v1313_v33 = vadd.s32 128, %v1292_v18 }
  0x6a   : > { %275 = vperm.xlu2 %913, %v223_v20  }
  0x6b   : > { %278 = vperm.xlu1 %915, %v224_v21   ;;  %v1297_v21 = vperm.slane %v1238_v24, 0 }
  0x6d   : > { %vm336_vm2 = vcmp.eq.s32.totalorder %v254_v27, %v1297_v21  ;;  %v249_v27 = vadd.s32 32, %v1285_v63 }
  0x6e   : > { %v838_v47 = vsel %vm336_vm2, 1.0, %v1609_v46 }
  0x72   : > { %281 = vperm.xlu2 %913, %v225_v22  }
  0x73   : > { %284 = vperm.xlu1 %915, %v226_v23  }
  0xad   : > { %v1273_v53 = vpop.xlane.xlu2 %453  ;;  %v1280_v59 = vpop.xlane.xlu1 %447 }
  0xae   : > { %1621 = vst [vmem:[#allocation11_spill] sm:$0xff] %v1273_v53  ;;  %v1275_v54 = vpop.xlane.xlu0 %441  ;;  %v472_v58 = vsub.f32 %v1219_v8, %v1273_v53  ;;  %v473_v28 = vsub.f32 %v1221_v9, %v1273_v53  ;;  %v468_v34 = vsub.f32 %v1208_v4, %v1280_v59  ;;  %v469_v24 = vsub.f32 %v1210_v5, %v1280_v59 }
  0xaf   : > { %1622 = vst [vmem:[#allocation12_spill] sm:$0xff] %v1280_v59  ;;  %v464_v60 = vsub.f32 %v1200_v0, %v1275_v54  ;;  %v465_v16 = vsub.f32 %v1202_v1, %v1275_v54 }
  0xb0   : > { %v496_v19 = vmul.f32 1.442695, %v472_v58  ;;  %v498_v39 = vmul.f32 1.442695, %v473_v28  ;;  %v488_v44 = vmul.f32 1.442695, %v468_v34 }
  0xb1   : > { %v480_v22 = vmul.f32 1.442695, %v464_v60  ;;  %v482_v29 = vmul.f32 1.442695, %v465_v16  ;;  %v1335_v58 = vmul.f32 1.442695, %v469_v24 }
  0xb2   : > { %916 = vpow2.f32 %v496_v19  ;;  %v839_v60 = vsel %vm337_vm3, 1.0, %v1609_v46 }
  0xb3   : > { %918 = vpow2.f32 %v480_v22  ;;  %v616_v22 = vsel %vm615_vm4, %v597_v42, %v614_v56  ;;  %v1378_v56 = vadd.s32 %v1289_v17, %v249_v27 }
  0xb4   : > { %920 = vpow2.f32 %v482_v29  ;;  %v1350_v26 = vmax.f32 %v1333_v52, %v616_v22 }
  0xb5   : > { %v1294_v20 = vpop.xlane.xlu2 %456  ;;  %v1320_v40 = vpop.xlane.xlu1 %450  ;;  %vm344_vm7 = vcmp.eq.s32.totalorder %v1378_v56, %v1297_v21  ;;  %vm345_vm10 = vcmp.eq.s32.totalorder %v1378_v56, %v1310_v32 }
  0xb6   : > { %v1299_v23 = vpop.xlane.xlu0 %444  ;;  %1624 = vst [vmem:[#allocation14_spill] sm:$0xff] %v1320_v40  ;;  %v474_v48 = vsub.f32 %v1223_v10, %v1294_v20  ;;  %v470_v49 = vsub.f32 %v1215_v6, %v1320_v40  ;;  %v471_v50 = vsub.f32 %v1217_v7, %v1320_v40  ;;  %v1362_v37 = vperm.slane %v1350_v26, 1 }
  0xb7   : > { %1623 = vst [vmem:[#allocation13_spill] sm:$0xff] %v1299_v23  ;;  %v466_v30 = vsub.f32 %v1204_v2, %v1299_v23  ;;  %v467_v31 = vsub.f32 %v1206_v3, %v1299_v23 }
  0xb8   : > { %v917_v57 = vpop.eup %916  ;;  %v1354_v29 = vmul.f32 1.442695, %v474_v48  ;;  %v625_v48 = vsub.f32 %v1202_v1, %v1362_v37  ;;  %v629_v27 = vsub.f32 %v1210_v5, %v1362_v37 }
  0xb9   : > { %v484_v35 = vmul.f32 1.442695, %v466_v30  ;;  %v486_v36 = vmul.f32 1.442695, %v467_v31  ;;  %v919_v62 = vpop.eup %918  ;;  %v492_v30 = vmul.f32 1.442695, %v470_v49 }
  0xba   : > { %v921_v25 = vpop.eup %920  ;;  %v494_v31 = vmul.f32 1.442695, %v471_v50 }
  0xbb   : > { %922 = vpow2.f32 %v484_v35  ;;  %v1367_v43 = vadd.f32 %v921_v25, %v919_v62  ;;  %v627_v62 = vsub.f32 %v1206_v3, %v1362_v37 }
  0xbc   : > { %924 = vpow2.f32 %v486_v36  ;;  %v1359_v36 = vperm.slane %v1350_v26, 0 }
  0xbd   : > { %v264_v45 = vpop.permute.xlu2 %263  ;;  %926 = vpow2.f32 %v498_v39  ;;  %v246_v39 = vadd.s32 8, %v1285_v63  ;;  %v1375_v50 = vpop.xlane.xlu1 %462 }
  0xbe   : > { %v1331_v51 = vpop.xlane.xlu0 %459  ;;  %vm286_vm5 = vcmp.eq.s32.totalorder %v1292_v18, %v264_v45  ;;  %928 = vpow2.f32 %v488_v44  ;;  %vm287_vm6 = vcmp.eq.s32.totalorder %v1313_v33, %v264_v45  ;;  %v624_v45 = vsub.f32 %v1200_v0, %v1359_v36  ;;  %1626 = vst [vmem:[#allocation16_spill] sm:$0xff] %v1375_v50 }
  0xbf   : > { %1625 = vst [vmem:[#allocation15_spill] sm:$0xff] %v1331_v51  ;;  %v476_v19 = vsub.f32 %v1227_v12, %v1331_v51  ;;  %v477_v34 = vsub.f32 %v1229_v13, %v1331_v51  ;;  %v822_v38 = vsel %vm286_vm5, 1.0, %v1609_v46  ;;  %v823_v41 = vsel %vm287_vm6, 1.0, %v1609_v46 }
  0xc0   : > { %v626_v49 = vsub.f32 %v1204_v2, %v1359_v36  ;;  %930 = vpow2.f32 %v492_v30  ;;  %v384_v22 = vadd.f32 %v838_v47, %v822_v38  ;;  %v385_v16 = vadd.f32 %v839_v60, %v823_v41 }
  0xc1   : > { %v923_v28 = vpop.eup %922  ;;  %v504_v24 = vmul.f32 1.442695, %v476_v19  ;;  %v506_v19 = vmul.f32 1.442695, %v477_v34  ;;  %932 = vpow2.f32 %v494_v31  ;;  %v1389_v46 = vadd.s32 %v1289_v17, %v246_v39 }
  0xc2   : > { %v925_v35 = vpop.eup %924  ;;  %v478_v47 = vsub.f32 %v1231_v14, %v1375_v50  ;;  %v630_v34 = vsub.f32 %v1215_v6, %v1359_v36  ;;  %v640_v31 = vmul.f32 1.442695, %v624_v45  ;;  %v642_v38 = vmul.f32 1.442695, %v625_v48 }
  0xc3   : > { %v515_v42 = vadd.f32 %v925_v35, %v923_v28  ;;  %v927_v44 = vpop.eup %926  ;;  %v628_v35 = vsub.f32 %v1208_v4, %v1359_v36  ;;  %934 = vpow2.f32 %v504_v24  ;;  %v631_v60 = vsub.f32 %v1217_v7, %v1362_v37 }
  0xc4   : > { %v1384_v28 = vpop.eup %928  ;;  %v1395_v30 = vadd.f32 %v927_v44, %v917_v57  ;;  %936 = vpow2.f32 %v506_v19  ;;  %v646_v39 = vmul.f32 1.442695, %v627_v62  ;;  %v400_v24 = vmul.f32 %v384_v22, %v1200_v0 }
  0xc5   : > { %516 = vadd.xlane.f32.xlu2 %v515_v42  ;;  %v1382_v25 = vpop.permute.xlu2 %272  ;;  %v644_v42 = vmul.f32 1.442695, %v626_v49  ;;  %v632_v41 = vsub.f32 %v1219_v8, %v1359_v36  ;;  %938 = vpow2.f32 %v640_v31  ;;  %v648_v55 = vmul.f32 1.442695, %v628_v35 }
  0xc6   : > { %v401_v57 = vmul.f32 %v385_v16, %v1202_v1  ;;  %v931_v44 = vpop.eup %930  ;;  %v633_v45 = vsub.f32 %v1221_v9, %v1362_v37  ;;  %940 = vpow2.f32 %v642_v38  ;;  %v650_v48 = vmul.f32 1.442695, %v629_v27 }
  0xc7   : > { %v479_v49 = vsub.f32 %v1233_v15, %v1375_v50  ;;  %v933_v19 = vpop.eup %932  ;;  %v634_v0 = vsub.f32 %v1223_v10, %v1359_v36  ;;  %v635_v62 = vsub.f32 %v1225_v11, %v1362_v37  ;;  %942 = vpow2.f32 %v644_v42 }
  0xc8   : > { %v652_v22 = vmul.f32 1.442695, %v630_v34  ;;  %v636_v1 = vsub.f32 %v1227_v12, %v1359_v36  ;;  %v637_v16 = vsub.f32 %v1229_v13, %v1362_v37  ;;  %944 = vpow2.f32 %v646_v39 }
  0xc9   : > { %v1413_v35 = vpop.eup %934  ;;  %v654_v27 = vmul.f32 1.442695, %v631_v60  ;;  %v638_v31 = vsub.f32 %v1231_v14, %v1359_v36  ;;  %946 = vpow2.f32 %v648_v55  ;;  %v656_v38 = vmul.f32 1.442695, %v632_v41 }
  0xca   : > { %v416_v50 = vadd.f32 %v401_v57, %v400_v24  ;;  %v937_v51 = vpop.eup %936  ;;  %v639_v34 = vsub.f32 %v1233_v15, %v1362_v37  ;;  %948 = vpow2.f32 %v650_v48  ;;  %v658_v42 = vmul.f32 1.442695, %v633_v45 }
  0xcb   : > { %v521_v53 = vadd.f32 %v933_v19, %v931_v44  ;;  %v939_v59 = vpop.eup %938  ;;  %950 = vpow2.f32 %v652_v22  ;;  %v660_v23 = vmul.f32 1.442695, %v634_v0  ;;  %v508_v60 = vmul.f32 1.442695, %v478_v47 }
  0xcc   : > { %417 = vadd.xlane.f32.xlu0 %v416_v50  ;;  %v941_v55 = vpop.eup %940  ;;  %952 = vpow2.f32 %v654_v27  ;;  %v662_v36 = vmul.f32 1.442695, %v635_v62  ;;  %v1627_v39 = vlaneseq  ;;  %v510_v37 = vmul.f32 1.442695, %v479_v49 }
  0xcd   : > { %v1423_v40 = vpop.permute.xlu2 %275  ;;  %522 = vadd.xlane.f32.xlu2 %v521_v53  ;;  %v943_v41 = vpop.eup %942  ;;  %954 = vpow2.f32 %v656_v38  ;;  %v664_v57 = vmul.f32 1.442695, %v636_v1  ;;  %v666_v44 = vmul.f32 1.442695, %v637_v16  ;;  %v668_v47 = vmul.f32 1.442695, %v638_v31 }
  0xce   : > { %vm1428_vm8 = vcmp.lt.s32.totalorder %v1627_v39, 256  ;;  %vm294_vm9 = vcmp.eq.s32.totalorder %v1292_v18, %v1423_v40  ;;  %v945_v50 = vpop.eup %944  ;;  %956 = vpow2.f32 %v658_v42  ;;  %v670_v45 = vmul.f32 1.442695, %v639_v34 }
  0xcf   : > { %714 = vst.msk [vmem:[#allocation2] sm:$0x3] %vm1428_vm8, %v1350_v26  ;;  %v672_v48 = vadd.f32 %v943_v41, %v939_v59  ;;  %v947_v49 = vpop.eup %946  ;;  %958 = vpow2.f32 %v660_v23  ;;  %v685_v19 = vadd.f32 %v945_v50, %v941_v55  ;;  %v699_v0 = vsub.f32 %v1333_v52, %v1350_v26 }
  0xd0   : > { %vm295_vm11 = vcmp.eq.s32.totalorder %v1313_v33, %v1423_v40  ;;  %v949_v22 = vpop.eup %948  ;;  %960 = vpow2.f32 %v662_v36  ;;  %v1630_v16 = vmov 0.0   ;;  %vm338_vm14 = vcmp.eq.s32.totalorder %v1389_v46, %v1297_v21 }
  0xd1   : > { %v267_v53 = vpop.permute.xlu0 %266  ;;  %v673_v1 = vadd.f32 %v947_v49, %v672_v48  ;;  %v830_v27 = vsel %vm294_vm9, 1.0, %v1630_v16  ;;  %v846_v59 = vsel %vm344_vm7, 1.0, %v1630_v16  ;;  %v951_v23 = vpop.eup %950  ;;  %962 = vpow2.f32 %v664_v57 }
  0xd2   : > { %v686_v31 = vadd.f32 %v949_v22, %v685_v19  ;;  %vm288_vm12 = vcmp.eq.s32.totalorder %v1292_v18, %v267_v53  ;;  %vm289_vm13 = vcmp.eq.s32.totalorder %v1313_v33, %v267_v53  ;;  %v953_v38 = vpop.eup %952  ;;  %964 = vpow2.f32 %v666_v44 }
  0xd3   : > { %v674_v34 = vadd.f32 %v951_v23, %v673_v1  ;;  %vm339_vm15 = vcmp.eq.s32.totalorder %v1389_v46, %v1310_v32  ;;  %v955_v42 = vpop.eup %954  ;;  %966 = vpow2.f32 %v668_v47  ;;  %v530_v36 = vadd.f32 %v937_v51, %v1413_v35 }
  0xd4   : > { %v687_v55 = vadd.f32 %v953_v38, %v686_v31  ;;  %513 = vadd.xlane.f32.xlu0 %v1367_v43  ;;  %v247_v39 = vadd.s32 16, %v1285_v63  ;;  %v957_v41 = vpop.eup %956  ;;  %968 = vpow2.f32 %v670_v45  ;;  %v824_v44 = vsel %vm288_vm12, 1.0, %v1630_v16 }
  0xd5   : > { %v270_v62 = vpop.permute.xlu1 %269  ;;  %v675_v57 = vadd.f32 %v955_v42, %v674_v34  ;;  %v825_v46 = vsel %vm289_vm13, 1.0, %v1630_v16  ;;  %v959_v50 = vpop.eup %958  ;;  %v840_v48 = vsel %vm338_vm14, 1.0, %v1630_v16  ;;  %v841_v43 = vsel %vm339_vm15, 1.0, %v1630_v16  ;;  %531 = vadd.xlane.f32.xlu2 %v530_v36 }
  0xd6   : > { %v688_v47 = vadd.f32 %v957_v41, %v687_v55  ;;  %v256_v51 = vadd.s32 %v1289_v17, %v247_v39  ;;  %v961_v35 = vpop.eup %960  ;;  %970 = vpow2.f32 %v508_v60  ;;  %vm290_vm0 = vcmp.eq.s32.totalorder %v1292_v18, %v270_v62 }
  0xd7   : > { %v676_v45 = vadd.f32 %v959_v50, %v675_v57  ;;  %vm291_vm1 = vcmp.eq.s32.totalorder %v1313_v33, %v270_v62  ;;  %v963_v49 = vpop.eup %962  ;;  %972 = vpow2.f32 %v510_v37  ;;  %v831_v1 = vsel %vm295_vm11, 1.0, %v1630_v16 }
  0xd8   : > { %v689_v19 = vadd.f32 %v961_v35, %v688_v47  ;;  %vm340_vm2 = vcmp.eq.s32.totalorder %v256_v51, %v1297_v21  ;;  %vm341_vm3 = vcmp.eq.s32.totalorder %v256_v51, %v1310_v32  ;;  %v965_v53 = vpop.eup %964  ;;  %v847_v60 = vsel %vm345_vm10, 1.0, %v1630_v16 }
  0xd9   : > { %v677_v22 = vadd.f32 %v963_v49, %v676_v45  ;;  %v386_v23 = vadd.f32 %v840_v48, %v824_v44  ;;  %v967_v38 = vpop.eup %966  ;;  %v387_v34 = vadd.f32 %v841_v43, %v825_v46  ;;  %v826_v42 = vsel %vm290_vm0, 1.0, %v1630_v16 }
  0xda   : > { %v690_v37 = vadd.f32 %v965_v53, %v689_v19  ;;  %v842_v55 = vsel %vm340_vm2, 1.0, %v1630_v16  ;;  %v969_v36 = vpop.eup %968  ;;  %974 = vpow2.f32 %v1335_v58  ;;  %v827_v56 = vsel %vm291_vm1, 1.0, %v1630_v16 }
  0xdb   : > { %v678_v40 = vadd.f32 %v967_v38, %v677_v22  ;;  %v843_v39 = vsel %vm341_vm3, 1.0, %v1630_v16  ;;  %976 = vpow2.f32 %v1354_v29  ;;  %v1631_v41 = vsub.f32 %v1225_v11, %v1294_v20 }
  0xdc   : > { %v691_v44 = vadd.f32 %v969_v36, %v690_v37  ;;  %v700_v58 = vmul.f32 1.442695, %v699_v0  ;;  %525 = vadd.xlane.f32.xlu0 %v1395_v30  ;;  %v971_v46 = vpop.eup %970  ;;  %v392_v50 = vadd.f32 %v846_v59, %v830_v27  ;;  %v393_v47 = vadd.f32 %v847_v60, %v831_v1 }
  0xdd   : > { %v279_v31 = vpop.permute.xlu1 %278  ;;  %v502_v57 = vmul.f32 1.442695, %v1631_v41  ;;  %v679_v62 = vrot.slane %v678_v40, 4  ;;  %v388_v48 = vadd.f32 %v842_v55, %v826_v42  ;;  %v973_v43 = vpop.eup %972  ;;  %v389_v35 = vadd.f32 %v843_v39, %v827_v56  ;;  %v698_v39 = vld [vmem:[#allocation3] sm:$0x3] }
  0xde   : > { %v692_v51 = vrot.slane %v691_v44, 4  ;;  %v402_v29 = vmul.f32 %v386_v23, %v1204_v2  ;;  %v403_v45 = vmul.f32 %v387_v34, %v1206_v3  ;;  %v533_v19 = vadd.f32 %v973_v43, %v971_v46 }
  0xdf   : > { %v680_v49 = vadd.f32 %v679_v62, %v678_v40  ;;  %v250_v53 = vadd.s32 40, %v1285_v63  ;;  %vm296_vm5 = vcmp.eq.s32.totalorder %v1292_v18, %v279_v31  ;;  %978 = vpow2.f32 %v700_v58 }
  0xe0   : > { %v693_v52 = vadd.f32 %v692_v51, %v691_v44  ;;  %v419_v26 = vadd.f32 %v403_v45, %v402_v29  ;;  %vm297_vm6 = vcmp.eq.s32.totalorder %v1313_v33, %v279_v31  ;;  %v975_v30 = vpop.eup %974  ;;  %vm342_vm7 = vcmp.eq.s32.totalorder %v1341_v61, %v1297_v21  ;;  %534 = vadd.xlane.f32.xlu2 %v533_v19 }
  0xe1   : > { %v681_v0 = vrot.slane %v680_v49, 2  ;;  %v259_v2 = vadd.s32 %v1289_v17, %v250_v53  ;;  %v832_v3 = vsel %vm296_vm5, 1.0, %v1630_v16  ;;  %v833_v27 = vsel %vm297_vm6, 1.0, %v1630_v16  ;;  %v1510_v59 = vpop.eup %976 }
  0xe2   : > { %v694_v22 = vrot.slane %v693_v52, 2  ;;  %vm343_vm9 = vcmp.eq.s32.totalorder %v1341_v61, %v1310_v32  ;;  %420 = vadd.xlane.f32.xlu1 %v419_v26  ;;  %v408_v1 = vmul.f32 %v392_v50, %v1219_v8  ;;  %v409_v60 = vmul.f32 %v393_v47, %v1221_v9 }
  0xe3   : > { %v404_v23 = vmul.f32 %v388_v48, %v1208_v4  ;;  %v682_v31 = vadd.f32 %v681_v0, %v680_v49  ;;  %vm346_vm10 = vcmp.eq.s32.totalorder %v259_v2, %v1297_v21  ;;  %vm347_vm11 = vcmp.eq.s32.totalorder %v259_v2, %v1310_v32  ;;  %v282_v0 = vpop.permute.xlu2 %281 }
  0xe4   : > { %v405_v38 = vmul.f32 %v389_v35, %v1210_v5  ;;  %980 = vpow2.f32 %v502_v57  ;;  %v695_v34 = vadd.f32 %v694_v22, %v693_v52  ;;  %v848_v42 = vsel %vm346_vm10, 1.0, %v1630_v16 }
  0xe5   : > { %v285_v37 = vpop.permute.xlu1 %284  ;;  %v849_v55 = vsel %vm347_vm11, 1.0, %v1630_v16  ;;  %v683_v36 = vrot.slane %v682_v31, 1  ;;  %v394_v8 = vadd.f32 %v848_v42, %v832_v3  ;;  %v979_v56 = vpop.eup %978  ;;  %v252_v41 = vadd.s32 56, %v1285_v63 }
  0xe6   : > { %v395_v40 = vadd.f32 %v849_v55, %v833_v27  ;;  %v422_v9 = vadd.f32 %v405_v38, %v404_v23  ;;  %v696_v4 = vrot.slane %v695_v34, 1  ;;  %vm300_vm12 = vcmp.eq.s32.totalorder %v1292_v18, %v285_v37 }
  0xe7   : > { %vm301_vm13 = vcmp.eq.s32.totalorder %v1313_v33, %v285_v37  ;;  %v684_v5 = vadd.f32 %v683_v36, %v682_v31  ;;  %vm292_vm14 = vcmp.eq.s32.totalorder %v1292_v18, %v1382_v25  ;;  %v518_v57 = vadd.f32 %v975_v30, %v1384_v28 }
  0xe8   : > { %v428_v44 = vadd.f32 %v409_v60, %v408_v1  ;;  %423 = vadd.xlane.f32.xlu0 %v422_v9  ;;  %v697_v58 = vadd.f32 %v696_v4, %v695_v34  ;;  %v261_v46 = vadd.s32 %v1289_v17, %v252_v41  ;;  %v410_v62 = vmul.f32 %v394_v8, %v1223_v10 }
  0xe9   : > { %v411_v50 = vmul.f32 %v395_v40, %v1225_v11  ;;  %v702_v47 = vmul.f32 %v979_v56, %v698_v39  ;;  %vm293_vm15 = vcmp.eq.s32.totalorder %v1313_v33, %v1382_v25  ;;  %v836_v48 = vsel %vm300_vm12, 1.0, %v1630_v16 }
  0xea   : > { %429 = vadd.xlane.f32.xlu2 %v428_v44  ;;  %v837_v43 = vsel %vm301_vm13, 1.0, %v1630_v16  ;;  %v981_v51 = vpop.eup %980  ;;  %v705_v28 = vrot.slane %v697_v58, 7  ;;  %v251_v35 = vadd.s32 48, %v1285_v63  ;;  %519 = vadd.xlane.f32.xlu1 %v518_v57  ;;  %vm350_vm0 = vcmp.eq.s32.totalorder %v261_v46, %v1297_v21  ;;  %v1633_v58 = vld [vmem:[#allocation12_spill] sm:$0xff] }
  0xeb   : > { %vm351_vm1 = vcmp.eq.s32.totalorder %v261_v46, %v1310_v32  ;;  %v852_v10 = vsel %vm350_vm0, 1.0, %v1630_v16  ;;  %v431_v29 = vadd.f32 %v411_v50, %v410_v62  ;;  %v844_v49 = vsel %vm342_vm7, 1.0, %v1630_v16 }
  0xec   : > { %v853_v11 = vsel %vm351_vm1, 1.0, %v1630_v16  ;;  %v706_v45 = vsel %vm615_vm4, %v684_v5, %v705_v28  ;;  %v398_v19 = vadd.f32 %v852_v10, %v836_v48  ;;  %v828_v52 = vsel %vm292_vm14, 1.0, %v1630_v16  ;;  %v1632_v5 = vld [vmem:[#allocation13_spill] sm:$0xff] }
  0xed   : > { %v399_v53 = vadd.f32 %v853_v11, %v837_v43  ;;  %v708_v63 = vadd.f32 %v706_v45, %v702_v47  ;;  %v829_v26 = vsel %vm293_vm15, 1.0, %v1630_v16  ;;  %v845_v30 = vsel %vm343_vm9, 1.0, %v1630_v16 }
  0xee   : > { %v260_v2 = vadd.s32 %v1289_v17, %v251_v35  ;;  %v414_v3 = vmul.f32 %v398_v19, %v1231_v14  ;;  %v390_v22 = vadd.f32 %v844_v49, %v828_v52  ;;  %v391_v1 = vadd.f32 %v845_v30, %v829_v26  ;;  %v1635_v19 = vld [vmem:[#allocation11_spill] sm:$0xff] }
  0xef   : > { %v415_v27 = vmul.f32 %v399_v53, %v1233_v15  ;;  %713 = vst.msk [vmem:[#allocation3] sm:$0x3] %vm1428_vm8, %v708_v63  ;;  %v527_v25 = vadd.f32 %v981_v51, %v1510_v59  ;;  %vm298_vm2 = vcmp.eq.s32.totalorder %v1292_v18, %v282_v0  ;;  %vm299_vm3 = vcmp.eq.s32.totalorder %v1313_v33, %v282_v0 }
  0xf0   : > { %432 = vadd.xlane.f32.xlu0 %v431_v29  ;;  %vm348_vm5 = vcmp.eq.s32.totalorder %v260_v2, %v1297_v21  ;;  %vm349_vm6 = vcmp.eq.s32.totalorder %v260_v2, %v1310_v32  ;;  %v406_v14 = vmul.f32 %v390_v22, %v1215_v6  ;;  %v407_v15 = vmul.f32 %v391_v1, %v1217_v7 }
  0xf1   : > { %v437_v60 = vadd.f32 %v415_v27, %v414_v3  ;;  %v834_v17 = vsel %vm298_vm2, 1.0, %v1630_v16  ;;  %v835_v61 = vsel %vm299_vm3, 1.0, %v1630_v16  ;;  %v850_v24 = vsel %vm348_vm5, 1.0, %v1630_v16 }
  0xf2   : > { %528 = vadd.xlane.f32.xlu1 %v527_v25  ;;  %v851_v18 = vsel %vm349_vm6, 1.0, %v1630_v16  ;;  %v396_v59 = vadd.f32 %v850_v24, %v834_v17  ;;  %v425_v23 = vadd.f32 %v407_v15, %v406_v14  ;;  %vm583_vm8 = vcmask 0  }
  0xf3   : > { %438 = vadd.xlane.f32.xlu2 %v437_v60  ;;  %v397_v33 = vadd.f32 %v851_v18, %v835_v61  ;;  %v1636_v60 = vld [vmem:[#allocation15_spill] sm:$0xff]  ;;  %v1637_v61 = vld [vmem:[#allocation16_spill] sm:$0xff] }
  0xf4   : > { %v412_v21 = vmul.f32 %v396_v59, %v1227_v12 }
  0xf5   : > { %v413_v32 = vmul.f32 %v397_v33, %v1229_v13 }
  0xf7   : > { %v434_v31 = vadd.f32 %v413_v32, %v412_v21 }
  0xfa   : > { %426 = vadd.xlane.f32.xlu1 %v425_v23 }
 0x102   : > { %435 = vadd.xlane.f32.xlu1 %v434_v31 }
 0x138   : > { %v517_v6 = vpop.xlane.xlu2 %516 }
 0x13f   : > { %v418_v7 = vpop.xlane.xlu0 %417 }
 0x140   : > { %v523_v38 = vpop.xlane.xlu2 %522 }
 0x147   : > { %v514_v37 = vpop.xlane.xlu0 %513 }
 0x148   : > { %982 = vlog2.f32 %v514_v37  ;;  %v532_v42 = vpop.xlane.xlu2 %531 }
 0x149   : > { %984 = vlog2.f32 %v517_v6 }
 0x14e   : > { %v983_v55 = vpop.eup %982 }
 0x14f   : > { %v526_v36 = vpop.xlane.xlu0 %525  ;;  %v985_v8 = vpop.eup %984  ;;  %v537_v40 = vmul.f32 0.6931472, %v983_v55 }
 0x150   : > { %v539_v12 = vmul.f32 0.6931472, %v985_v8 }
 0x151   : > { %v552_v56 = vadd.f32 %v537_v40, %v1275_v54  ;;  %v1634_v54 = vld [vmem:[#allocation14_spill] sm:$0xff] }
 0x152   : > { %v553_v57 = vadd.f32 %v539_v12, %v1632_v5 }
 0x153   : > { %v535_v13 = vpop.xlane.xlu2 %534  ;;  %v561_v47 = vsub.f32 %v552_v56, %v418_v7 }
 0x155   : > { %v421_v34 = vpop.xlane.xlu1 %420 }
 0x156   : > { %v562_v48 = vsub.f32 %v553_v57, %v421_v34 }
 0x158   : > { %v569_v35 = vadd.f32 %v562_v48, %v561_v47 }
 0x15b   : > { %v424_v62 = vpop.xlane.xlu0 %423 }
 0x15d   : > { %v520_v16 = vpop.xlane.xlu1 %519  ;;  %v430_v29 = vpop.xlane.xlu2 %429 }
 0x15e   : > { %986 = vlog2.f32 %v520_v16 }
 0x15f   : > { %988 = vlog2.f32 %v523_v38  ;;  %v560_v38 = vld [vmem:[#allocation4] sm:$0x1] }
 0x160   : > { %990 = vlog2.f32 %v526_v36 }
 0x163   : > { %v433_v27 = vpop.xlane.xlu0 %432 }
 0x164   : > { %v987_v9 = vpop.eup %986 }
 0x165   : > { %v989_v4 = vpop.eup %988  ;;  %v541_v39 = vmul.f32 0.6931472, %v987_v9  ;;  %v529_v41 = vpop.xlane.xlu1 %528 }
 0x166   : > { %992 = vlog2.f32 %v529_v41  ;;  %v991_v44 = vpop.eup %990  ;;  %v543_v50 = vmul.f32 0.6931472, %v989_v4  ;;  %v439_v15 = vpop.xlane.xlu2 %438 }
 0x167   : > { %994 = vlog2.f32 %v532_v42  ;;  %v554_v46 = vadd.f32 %v541_v39, %v1633_v58  ;;  %v545_v43 = vmul.f32 0.6931472, %v991_v44 }
 0x168   : > { %996 = vlog2.f32 %v535_v13  ;;  %v555_v10 = vadd.f32 %v543_v50, %v1634_v54 }
 0x169   : > { %v563_v51 = vsub.f32 %v554_v46, %v424_v62  ;;  %v556_v53 = vadd.f32 %v545_v43, %v1635_v19 }
 0x16b   : > { %v570_v63 = vadd.f32 %v569_v35, %v563_v51  ;;  %v565_v2 = vsub.f32 %v556_v53, %v430_v29 }
 0x16c   : > { %v993_v28 = vpop.eup %992 }
 0x16d   : > { %v995_v11 = vpop.eup %994  ;;  %v547_v45 = vmul.f32 0.6931472, %v993_v28  ;;  %v427_v49 = vpop.xlane.xlu1 %426 }
 0x16e   : > { %v564_v52 = vsub.f32 %v555_v10, %v427_v49  ;;  %v997_v26 = vpop.eup %996  ;;  %v549_v0 = vmul.f32 0.6931472, %v995_v11 }
 0x16f   : > { %v557_v30 = vadd.f32 %v547_v45, %v1294_v20  ;;  %v551_v22 = vmul.f32 0.6931472, %v997_v26 }
 0x170   : > { %v571_v3 = vadd.f32 %v570_v63, %v564_v52  ;;  %v558_v14 = vadd.f32 %v549_v0, %v1636_v60 }
 0x171   : > { %v566_v1 = vsub.f32 %v557_v30, %v433_v27  ;;  %v559_v24 = vadd.f32 %v551_v22, %v1637_v61 }
 0x172   : > { %v572_v25 = vadd.f32 %v571_v3, %v565_v2 }
 0x173   : > { %v568_v33 = vsub.f32 %v559_v24, %v439_v15 }
 0x174   : > { %v573_v59 = vadd.f32 %v572_v25, %v566_v1 }
 0x175   : > { %v436_v17 = vpop.xlane.xlu1 %435 }
 0x176   : > { %v567_v18 = vsub.f32 %v558_v14, %v436_v17 }
 0x178   : > { %v574_v23 = vadd.f32 %v573_v59, %v567_v18 }
 0x17a   : > { %v575_v21 = vadd.f32 %v574_v23, %v568_v33 }
 0x17c   : > { %v576_v32 = vrot.slane %v575_v21, 4 }
 0x17e   : > { %v577_v20 = vadd.f32 %v576_v32, %v575_v21 }
 0x180   : > { %v578_v31 = vrot.slane %v577_v20, 2 }
 0x182   : > { %v579_v6 = vadd.f32 %v578_v31, %v577_v20 }
 0x184   : > { %v580_v7 = vrot.slane %v579_v6, 1 }
 0x186   : > { %v581_v37 = vadd.f32 %v580_v7, %v579_v6  ;;  %718 = sbr.rel (%p854_p8) target bundleno = 533 (0x215), region = 44 }
 0x188   : > { %v582_v34 = vadd.f32 %v581_v37, %v560_v38 }
 0x18a   : > { %584 = vst.msk [vmem:[#allocation4] sm:$0x1] %vm583_vm8, %v582_v34 }
 0x18b   : > { %v719_v42 = vld [vmem:[#allocation3] sm:$0x3]  ;;  %v722_v16 = vld [vmem:[#allocation2] sm:$0x3] }
 0x18c   : > { %998 = vlog2.f32 %v719_v42 }
 0x191   : > { %v724_v4 = vld [vmem:[#allocation4] sm:$0x1] }
 0x192   : > { %v999_v55 = vpop.eup %998 }
 0x193   : > { %v721_v36 = vmul.f32 0.6931472, %v999_v55 }
 0x195   : > { %v723_v8 = vadd.f32 %v722_v16, %v721_v36 }
 0x197   : > { %v726_v40 = vperm.slane %v723_v8, 0  ;;  %v727_v12 = vperm.slane %v723_v8, 1 }
 0x199   : > { %v730_v13 = vsel %vm615_vm4, %v726_v40, 0.0  ;;  %v731_v9 = vsel %vm615_vm4, %v727_v12, 0.0 }
 0x19a   : > { %v732_v56 = vadd.f32 %v731_v9, %v730_v13 }
 0x19c   : > { %733 = vadd.xlane.f32.xlu0 %v732_v56 }
 0x20f   : > { %v734_v39 = vpop.xlane.xlu0 %733 }
 0x210   : > { %v735_v41 = vadd.f32 %v734_v39, %v724_v4 }
 0x212   : > { %v736_v5 = vmul.f32 0.001953125, %v735_v41 }
 0x214   : > { %737 = vst.msk [vmem:[#allocation8] sm:$0x1] %vm583_vm8, %v736_v5 }
 0x215 PF: > { %p872_p9 = scmp.eq.s32.totalorder %s1144_s16, 3  ;;  %s1104_s6 = smov [#allocation8]  }
 0x216   : > { %s744_s7 = sshll.u32 %s1104_s6, 4  ;;  %s746_s10 = sshll.u32 %s1608_s3, 4  ;;  %s745_s7 = int_to_ptr.vmem [resolvable:$true] %s744_s7  ;;  %s747_s10 = int_to_ptr.hbm [resolvable:$true] %s746_s10 }
 0x217   : > { %864 = dma.vmem_to_hbm [thread:$0]  (%p872_p9), %s745_s7, 16, %s747_s10, [#allocation7]  }
 0x218   : > { %1079 = dma.done.wait (%p872_p9), [#allocation7], 16  }
 0x219   : > { %1081 = vsyncadd (%p872_p9), [#allocation7], 4294967280 }
 0x21a PF: > { %p14_p10 = scmp.ge.s32.totalorder %s1147_s17, 6   ;;  %s1638_s12 = smov %s1088_s13 }
 0x21b   : > { %s1639_s13 = smov %s1092_s14  ;;  %s1640_s14 = smov %s1157_s20 }
 0x21c   : > { %s1641_s15 = smov %s1147_s17  ;;  %16 = sbr.rel (!%p14_p10) target bundleno = 4 (0x4), region = 80 }
 0x221   :  { %760 = vsyncpa [#allocation6], 1 }
 0x222   :  { %762 = vsyncpa [#allocation6 + $0x1], 1 }
 0x223   :  { %763 = vsyncpa [#allocation7], 1 }
 0x224   :  { %765 = vsyncpa [#allocation7 + $0x1], 1 }

</bundles_post_ra>
